<compile_context>
chip_gen: v6e
topology: v6e:2x2x1
jax: 0.10.0
libtpu: 0.0.40
codegen_flags: <defaults>
</compile_context>

<pallas_src>
import jax
import jax.numpy as jnp
from jax import lax
from jax.experimental import pallas as pl
from jax.experimental.pallas import tpu as pltpu

EMBED_SIZE = 100
HIDDEN = 8
NUM_CLASSES = 2
VOCAB = 50  # stand-in for len(dictionary)

LANE = 128
SUBLANE = 8


def _round_up(x, m):
    return ((x + m - 1) // m) * m


def rnn_kernel(ids_ref, tbl_ref, whh_ref, wout_ref, bout_ref, out_ref):
    SB = ids_ref.shape[0]          # S * B_pad (time-major, batch-padded)
    Vp = tbl_ref.shape[0]          # padded vocab (lane-dense 128)
    Hp = whh_ref.shape[0]          # padded hidden (128)
    Bp = out_ref.shape[0]          # padded batch (multiple of 8)
    S = SB // Bp                   # static number of time steps

    # --- Fused embedding gather + input projection + bias in ONE matmul:
    #     one-hot(ids) @ (emb @ W_ih + b_ih + b_hh)   (table pre-folded on host)
    ids = ids_ref[...]                                        # (SB, 1) int32
    lanes = lax.broadcasted_iota(jnp.int32, (SB, Vp), 1)      # (SB, Vp)
    onehot = (lanes == ids).astype(jnp.float32)               # exact row select
    xproj = jnp.dot(onehot, tbl_ref[...],
                    preferred_element_type=jnp.float32)       # (SB, H_pad)

    # --- Recurrence: only h @ W_hh + tanh on the critical chain. ---
    whh = whh_ref[...]
    h = jnp.zeros((Bp, Hp), jnp.float32)                      # h_0 = 0 (PyTorch default)
    for t in range(S):                                        # S is static: fully unrolled
        x_t = xproj[t * Bp:(t + 1) * Bp, :]                   # sublane-aligned static slice
        h = jnp.tanh(x_t + jnp.dot(h, whh,
                                   preferred_element_type=jnp.float32))

    # --- output = Linear(r_out[-1]), lane-dense (Bp, 128) store. ---
    out_ref[...] = (jnp.dot(h, wout_ref[...],
                            preferred_element_type=jnp.float32)
                    + bout_ref[...]).astype(out_ref.dtype)


def rnn_forward_pallas(ids, padded_params, b_pad):
    tbl_p, whh_p, wout_p, bout_p = padded_params
    sb = ids.shape[0]
    vp, hp = tbl_p.shape
    cp = wout_p.shape[1]
    return pl.pallas_call(
        rnn_kernel,
        out_shape=jax.ShapeDtypeStruct((b_pad, cp), jnp.float32),
        grid_spec=pltpu.PrefetchScalarGridSpec(
            num_scalar_prefetch=0,
            grid=(1,),                                   # single invocation: no per-step overhead
            in_specs=[
                pl.BlockSpec((sb, 1), lambda i: (0, 0)),     # token ids (time-major, batch-padded)
                pl.BlockSpec((vp, hp), lambda i: (0, 0)),    # folded emb@W_ih + bias table
                pl.BlockSpec((hp, hp), lambda i: (0, 0)),    # W_hh^T (padded)
                pl.BlockSpec((hp, cp), lambda i: (0, 0)),    # W_out^T (padded)
                pl.BlockSpec((1, cp), lambda i: (0, 0)),     # b_out (padded)
            ],
            out_specs=pl.BlockSpec((b_pad, cp), lambda i: (0, 0)),
        ),
        compiler_params=pltpu.CompilerParams(
            dimension_semantics=("arbitrary",)),
    )(ids, tbl_p, whh_p, wout_p, bout_p)


def init_params(key):
    ks = jax.random.split(key, 7)
    bound = 1.0 / float(HIDDEN) ** 0.5
    emb = jax.random.normal(ks[0], (VOCAB, EMBED_SIZE), jnp.float32)
    wih = jax.random.uniform(ks[1], (EMBED_SIZE, HIDDEN), jnp.float32, -bound, bound)
    whh = jax.random.uniform(ks[2], (HIDDEN, HIDDEN), jnp.float32, -bound, bound)
    bih = jax.random.uniform(ks[3], (1, HIDDEN), jnp.float32, -bound, bound)
    bhh = jax.random.uniform(ks[4], (1, HIDDEN), jnp.float32, -bound, bound)
    wout = jax.random.uniform(ks[5], (HIDDEN, NUM_CLASSES), jnp.float32, -bound, bound)
    bout = jax.random.uniform(ks[6], (1, NUM_CLASSES), jnp.float32, -bound, bound)
    return emb, (wih, whh, bih, bhh, wout, bout)


def pad_params(emb, params):
    """One-time weight folding + zero-padding to lane-dense (128-wide) layouts."""
    wih, whh, bih, bhh, wout, bout = params
    V, E = emb.shape
    H = wih.shape[1]
    C = wout.shape[1]
    Vp, Hp, Cp = _round_up(V, LANE), _round_up(H, LANE), _round_up(C, LANE)

    # Fold Embedding @ W_ih + (b_ih + b_hh) into one (V, H) lookup table.
    tbl = (jnp.dot(emb, wih, precision=lax.Precision.HIGHEST) + bih + bhh)
    tbl_p = jnp.zeros((Vp, Hp), jnp.float32).at[:V, :H].set(tbl)   # padded H lanes stay 0
    whh_p = jnp.zeros((Hp, Hp), jnp.float32).at[:H, :H].set(whh)
    wout_p = jnp.zeros((Hp, Cp), jnp.float32).at[:H, :C].set(wout)
    bout_p = jnp.zeros((1, Cp), jnp.float32).at[:, :C].set(bout)
    return tbl_p, whh_p, wout_p, bout_p


def rnn_forward(inputs, padded_params):
    # inputs: (batch, seq) int32 token ids — same call convention as the PyTorch module.
    B, S = inputs.shape
    Bp = _round_up(B, SUBLANE)
    ids = jnp.transpose(inputs).astype(jnp.int32)          # inputs.t() -> (seq, batch)
    ids = jnp.pad(ids, ((0, 0), (0, Bp - B)))              # padded batch rows use token 0
    ids = ids.reshape(S * Bp, 1)                           # time-major flat ids
    out_p = rnn_forward_pallas(ids, padded_params, Bp)     # (Bp, Cp)
    return out_p[:B, :NUM_CLASSES]


def rnn_reference(inputs, emb, params):
    wih, whh, bih, bhh, wout, bout = params
    hi = lax.Precision.HIGHEST
    x = emb[inputs.T]
    h = jnp.zeros((inputs.shape[0], HIDDEN), jnp.float32)
    for t in range(x.shape[0]):
        h = jnp.tanh(jnp.dot(x[t], wih, precision=hi)
                     + jnp.dot(h, whh, precision=hi) + bih + bhh)
    return jnp.dot(h, wout, precision=hi) + bout


if __name__ == "__main__":
    emb, params = init_params(jax.random.PRNGKey(0))
    padded_params = pad_params(emb, params)

    BATCH, SEQ = 2, 8
    inputs = jax.random.randint(jax.random.PRNGKey(1), (BATCH, SEQ), 1, VOCAB,
                                dtype=jnp.int32)

    out = rnn_forward(inputs, padded_params)
    out = jax.block_until_ready(out)

    ref = rnn_reference(inputs, emb, params)
    assert out.shape == (BATCH, NUM_CLASSES)
    assert jnp.allclose(out, ref, atol=1e-5, rtol=1e-5)
    print("KERNEL_OK")
</pallas_src>

<mosaic_0001>
module attributes {stable_mosaic.version = 11 : i64} {
  func.func @rnn_kernel(%arg0: i32, %arg1: memref<64x1xi32, #tpu.memory_space<vmem>>, %arg2: memref<128x128xf32, #tpu.memory_space<vmem>>, %arg3: memref<128x128xf32, #tpu.memory_space<vmem>>, %arg4: memref<128x128xf32, #tpu.memory_space<vmem>>, %arg5: memref<1x128xf32, #tpu.memory_space<vmem>>, %arg6: memref<8x128xf32, #tpu.memory_space<vmem>>) attributes {dimension_semantics = [#tpu.dimension_semantics<arbitrary>], iteration_bounds = array<i64: 1>, scalar_prefetch = 0 : i64, scratch_operands = 0 : i64, tpu.core_type = #tpu.core_type<tc>, window_params = [{pipeline_mode = #tpu.pipeline_mode<synchronous>, transform_indices = @transform_0, window_bounds = array<i64: 64, 1>}, {pipeline_mode = #tpu.pipeline_mode<synchronous>, transform_indices = @transform_1, window_bounds = array<i64: 128, 128>}, {pipeline_mode = #tpu.pipeline_mode<synchronous>, transform_indices = @transform_2, window_bounds = array<i64: 128, 128>}, {pipeline_mode = #tpu.pipeline_mode<synchronous>, transform_indices = @transform_3, window_bounds = array<i64: 128, 128>}, {pipeline_mode = #tpu.pipeline_mode<synchronous>, transform_indices = @transform_4, window_bounds = array<i64: 1, 128>}, {pipeline_mode = #tpu.pipeline_mode<synchronous>, transform_indices = @transform_5, window_bounds = array<i64: 8, 128>}]} {
    %c0 = arith.constant 0 : index
    %c0_0 = arith.constant 0 : index
    %0 = vector.load %arg1[%c0, %c0_0] : memref<64x1xi32, #tpu.memory_space<vmem>>, vector<64x1xi32>
    %1 = tpu.iota {dimensions = array<i32: 1>} : vector<64x128xi32>
    %2 = vector.broadcast %0 : vector<64x1xi32> to vector<64x128xi32>
    %3 = arith.cmpi eq, %1, %2 : vector<64x128xi32>
    %4 = arith.extui %3 : vector<64x128xi1> to vector<64x128xi32>
    %5 = arith.sitofp %4 : vector<64x128xi32> to vector<64x128xf32>
    %c0_1 = arith.constant 0 : index
    %c0_2 = arith.constant 0 : index
    %6 = vector.load %arg2[%c0_1, %c0_2] : memref<128x128xf32, #tpu.memory_space<vmem>>, vector<128x128xf32>
    %cst = arith.constant dense<0.000000e+00> : vector<64x128xf32>
    %7 = tpu.matmul %5, %6, %cst {dimension_numbers = #tpu.dot_dimension_numbers<[1], [0], [0], [1], [0, 0, 1, 1], [], []>} : vector<64x128xf32>, vector<128x128xf32>, vector<64x128xf32> -> vector<64x128xf32>
    %c0_3 = arith.constant 0 : index
    %c0_4 = arith.constant 0 : index
    %8 = vector.load %arg3[%c0_3, %c0_4] : memref<128x128xf32, #tpu.memory_space<vmem>>, vector<128x128xf32>
    %cst_5 = arith.constant 0.000000e+00 : f32
    %9 = vector.broadcast %cst_5 : f32 to vector<8x128xf32>
    %10 = vector.extract_strided_slice %7 {offsets = [0, 0], sizes = [8, 128], strides = [1, 1]} : vector<64x128xf32> to vector<8x128xf32>
    %cst_6 = arith.constant dense<0.000000e+00> : vector<8x128xf32>
    %11 = tpu.matmul %9, %8, %cst_6 {dimension_numbers = #tpu.dot_dimension_numbers<[1], [0], [0], [1], [0, 0, 1, 1], [], []>} : vector<8x128xf32>, vector<128x128xf32>, vector<8x128xf32> -> vector<8x128xf32>
    %12 = arith.addf %10, %11 : vector<8x128xf32>
    %13 = math.tanh %12 : vector<8x128xf32>
    %14 = vector.extract_strided_slice %7 {offsets = [8, 0], sizes = [8, 128], strides = [1, 1]} : vector<64x128xf32> to vector<8x128xf32>
    %cst_7 = arith.constant dense<0.000000e+00> : vector<8x128xf32>
    %15 = tpu.matmul %13, %8, %cst_7 {dimension_numbers = #tpu.dot_dimension_numbers<[1], [0], [0], [1], [0, 0, 1, 1], [], []>} : vector<8x128xf32>, vector<128x128xf32>, vector<8x128xf32> -> vector<8x128xf32>
    %16 = arith.addf %14, %15 : vector<8x128xf32>
    %17 = math.tanh %16 : vector<8x128xf32>
    %18 = vector.extract_strided_slice %7 {offsets = [16, 0], sizes = [8, 128], strides = [1, 1]} : vector<64x128xf32> to vector<8x128xf32>
    %cst_8 = arith.constant dense<0.000000e+00> : vector<8x128xf32>
    %19 = tpu.matmul %17, %8, %cst_8 {dimension_numbers = #tpu.dot_dimension_numbers<[1], [0], [0], [1], [0, 0, 1, 1], [], []>} : vector<8x128xf32>, vector<128x128xf32>, vector<8x128xf32> -> vector<8x128xf32>
    %20 = arith.addf %18, %19 : vector<8x128xf32>
    %21 = math.tanh %20 : vector<8x128xf32>
    %22 = vector.extract_strided_slice %7 {offsets = [24, 0], sizes = [8, 128], strides = [1, 1]} : vector<64x128xf32> to vector<8x128xf32>
    %cst_9 = arith.constant dense<0.000000e+00> : vector<8x128xf32>
    %23 = tpu.matmul %21, %8, %cst_9 {dimension_numbers = #tpu.dot_dimension_numbers<[1], [0], [0], [1], [0, 0, 1, 1], [], []>} : vector<8x128xf32>, vector<128x128xf32>, vector<8x128xf32> -> vector<8x128xf32>
    %24 = arith.addf %22, %23 : vector<8x128xf32>
    %25 = math.tanh %24 : vector<8x128xf32>
    %26 = vector.extract_strided_slice %7 {offsets = [32, 0], sizes = [8, 128], strides = [1, 1]} : vector<64x128xf32> to vector<8x128xf32>
    %cst_10 = arith.constant dense<0.000000e+00> : vector<8x128xf32>
    %27 = tpu.matmul %25, %8, %cst_10 {dimension_numbers = #tpu.dot_dimension_numbers<[1], [0], [0], [1], [0, 0, 1, 1], [], []>} : vector<8x128xf32>, vector<128x128xf32>, vector<8x128xf32> -> vector<8x128xf32>
    %28 = arith.addf %26, %27 : vector<8x128xf32>
    %29 = math.tanh %28 : vector<8x128xf32>
    %30 = vector.extract_strided_slice %7 {offsets = [40, 0], sizes = [8, 128], strides = [1, 1]} : vector<64x128xf32> to vector<8x128xf32>
    %cst_11 = arith.constant dense<0.000000e+00> : vector<8x128xf32>
    %31 = tpu.matmul %29, %8, %cst_11 {dimension_numbers = #tpu.dot_dimension_numbers<[1], [0], [0], [1], [0, 0, 1, 1], [], []>} : vector<8x128xf32>, vector<128x128xf32>, vector<8x128xf32> -> vector<8x128xf32>
    %32 = arith.addf %30, %31 : vector<8x128xf32>
    %33 = math.tanh %32 : vector<8x128xf32>
    %34 = vector.extract_strided_slice %7 {offsets = [48, 0], sizes = [8, 128], strides = [1, 1]} : vector<64x128xf32> to vector<8x128xf32>
    %cst_12 = arith.constant dense<0.000000e+00> : vector<8x128xf32>
    %35 = tpu.matmul %33, %8, %cst_12 {dimension_numbers = #tpu.dot_dimension_numbers<[1], [0], [0], [1], [0, 0, 1, 1], [], []>} : vector<8x128xf32>, vector<128x128xf32>, vector<8x128xf32> -> vector<8x128xf32>
    %36 = arith.addf %34, %35 : vector<8x128xf32>
    %37 = math.tanh %36 : vector<8x128xf32>
    %38 = vector.extract_strided_slice %7 {offsets = [56, 0], sizes = [8, 128], strides = [1, 1]} : vector<64x128xf32> to vector<8x128xf32>
    %cst_13 = arith.constant dense<0.000000e+00> : vector<8x128xf32>
    %39 = tpu.matmul %37, %8, %cst_13 {dimension_numbers = #tpu.dot_dimension_numbers<[1], [0], [0], [1], [0, 0, 1, 1], [], []>} : vector<8x128xf32>, vector<128x128xf32>, vector<8x128xf32> -> vector<8x128xf32>
    %40 = arith.addf %38, %39 : vector<8x128xf32>
    %41 = math.tanh %40 : vector<8x128xf32>
    %c0_14 = arith.constant 0 : index
    %c0_15 = arith.constant 0 : index
    %42 = vector.load %arg4[%c0_14, %c0_15] : memref<128x128xf32, #tpu.memory_space<vmem>>, vector<128x128xf32>
    %cst_16 = arith.constant dense<0.000000e+00> : vector<8x128xf32>
    %43 = tpu.matmul %41, %42, %cst_16 {dimension_numbers = #tpu.dot_dimension_numbers<[1], [0], [0], [1], [0, 0, 1, 1], [], []>} : vector<8x128xf32>, vector<128x128xf32>, vector<8x128xf32> -> vector<8x128xf32>
    %c0_17 = arith.constant 0 : index
    %c0_18 = arith.constant 0 : index
    %44 = vector.load %arg5[%c0_17, %c0_18] : memref<1x128xf32, #tpu.memory_space<vmem>>, vector<1x128xf32>
    %45 = vector.broadcast %44 : vector<1x128xf32> to vector<8x128xf32>
    %46 = arith.addf %43, %45 : vector<8x128xf32>
    %c0_19 = arith.constant 0 : index
    %c0_20 = arith.constant 0 : index
    %47 = vector.load %arg6[%c0_19, %c0_20] : memref<8x128xf32, #tpu.memory_space<vmem>>, vector<8x128xf32>
    tpu.vector_store %arg6[%c0_19, %c0_20], %46 {strides = array<i32>} : memref<8x128xf32, #tpu.memory_space<vmem>>, vector<8x128xf32>,
    return
  }
  func.func @transform_0(%arg0: i32) -> (i32, i32) {
    %c0_i32 = arith.constant 0 : i32
    %c0_i32_0 = arith.constant 0 : i32
    %c0_i32_1 = arith.constant 0 : i32
    return %c0_i32, %c0_i32_0 : i32, i32
  }
  func.func @transform_1(%arg0: i32) -> (i32, i32) {
    %c0_i32 = arith.constant 0 : i32
    %c0_i32_0 = arith.constant 0 : i32
    %c0_i32_1 = arith.constant 0 : i32
    return %c0_i32, %c0_i32_0 : i32, i32
  }
  func.func @transform_2(%arg0: i32) -> (i32, i32) {
    %c0_i32 = arith.constant 0 : i32
    %c0_i32_0 = arith.constant 0 : i32
    %c0_i32_1 = arith.constant 0 : i32
    return %c0_i32, %c0_i32_0 : i32, i32
  }
  func.func @transform_3(%arg0: i32) -> (i32, i32) {
    %c0_i32 = arith.constant 0 : i32
    %c0_i32_0 = arith.constant 0 : i32
    %c0_i32_1 = arith.constant 0 : i32
    return %c0_i32, %c0_i32_0 : i32, i32
  }
  func.func @transform_4(%arg0: i32) -> (i32, i32) {
    %c0_i32 = arith.constant 0 : i32
    %c0_i32_0 = arith.constant 0 : i32
    %c0_i32_1 = arith.constant 0 : i32
    return %c0_i32, %c0_i32_0 : i32, i32
  }
  func.func @transform_5(%arg0: i32) -> (i32, i32) {
    %c0_i32 = arith.constant 0 : i32
    %c0_i32_0 = arith.constant 0 : i32
    %c0_i32_1 = arith.constant 0 : i32
    return %c0_i32, %c0_i32_0 : i32, i32
  }
}

</mosaic_0001>

<bundles_post_ra>
// kernel: tpu_custom_call.1
= control target key start
LH: loop header
LB: loop body
LE: loop exit
PB: predicated region body
PF: predicated region fallthrough
CT: control target
= control target key end

     0   :  { %10 = vsyncpa [#allocation3], 0  ;;  %s2027_s0 = inlined_call_operand.vmem [shape: s32[64,1], index: 0, kind: input, shape index: {}]   ;;  %s2028_s1 = inlined_call_operand.hbm [shape: f32[128,128], index: 1, kind: input, shape index: {}]   ;;  %s2029_s2 = inlined_call_operand.hbm [shape: f32[128,128], index: 2, kind: input, shape index: {}]   ;;  %s2030_s3 = inlined_call_operand.hbm [shape: f32[128,128], index: 3, kind: input, shape index: {}]   ;;  %s2031_s4 = inlined_call_operand.vmem [shape: f32[1,128], index: 4, kind: input, shape index: {}]   ;;  %s2032_s5 = inlined_call_operand.hbm [shape: f32[8,128], index: 5, kind: output, shape index: {}]  }
   0x1   :  { %11 = vsyncpa [#allocation6], 0 }
   0x2   :  { %12 = vsyncpa [#allocation4], 0  ;;  %s1610_s18 = smov [#allocation5]   ;;  %s1611_s20 = smov [#allocation2]  }
   0x3   :  { %s32_s19 = sshll.u32 %s1610_s18, 4  ;;  %s20_s21 = sshll.u32 %s1611_s20, 4  ;;  %s33_s19 = int_to_ptr.vmem [resolvable:$true] %s32_s19  ;;  %s21_s21 = int_to_ptr.vmem [resolvable:$true] %s20_s21 }
   0x4   :  { %s1532_s22 = scalar_lea.vmem %s33_s19, 2048  ;;  %p1537_p1 = scmp.lt.s32.totalorder %s33_s19, %s33_s19 }
   0x5   :  { %p1533_p0 = scmp.ne.s32.totalorder %s33_s19, %s1532_s22  ;;  %p1538_p2 = scmp.lt.s32.totalorder %s1532_s22, %s1532_s22 }
   0x7   :  { %p1539_p3 = por %p1538_p2, %p1537_p1 }
   0x9   :  { %p1540_p4 = pnand %p1539_p3, %p1533_p0 }
   0xb   :  { %1543 = shalt.err (!%p1540_p4)
}
   0xc   :  { %s1612_s23 = smov 128   ;;  %s1613_s24 = smov 8  }
   0xd   :  { %38 = dma.hbm_to_vmem [thread:$0]  %s2029_s2, 2048, %s33_s19, [#allocation6], %s1612_s23, %s1612_s23, %s1613_s24  }
   0xe   :  { %s1552_s27 = scalar_lea.vmem %s21_s21, 2048  ;;  %p1557_p6 = scmp.lt.s32.totalorder %s21_s21, %s21_s21 }
   0xf   :  { %p1553_p5 = scmp.ne.s32.totalorder %s21_s21, %s1552_s27  ;;  %p1558_p7 = scmp.lt.s32.totalorder %s1552_s27, %s1552_s27 }
  0x11   :  { %p1559_p8 = por %p1558_p7, %p1557_p6 }
  0x13   :  { %p1560_p9 = pnand %p1559_p8, %p1553_p5 }
  0x15   :  { %1563 = shalt.err (!%p1560_p9)
}
  0x16   :  { %26 = dma.hbm_to_vmem [thread:$0]  %s2028_s1, 2048, %s21_s21, [#allocation3], %s1612_s23, %s1612_s23, %s1613_s24  }
  0x17   :  { %s1614_s30 = smov [#allocation7]  }
  0x18   :  { %s44_s6 = sshll.u32 %s1614_s30, 4  ;;  %s45_s6 = int_to_ptr.vmem [resolvable:$true] %s44_s6 }
  0x19   :  { %s1572_s7 = scalar_lea.vmem %s45_s6, 2048  ;;  %p1577_p11 = scmp.lt.s32.totalorder %s45_s6, %s45_s6 }
  0x1a   :  { %p1573_p10 = scmp.ne.s32.totalorder %s45_s6, %s1572_s7  ;;  %p1578_p12 = scmp.lt.s32.totalorder %s1572_s7, %s1572_s7 }
  0x1c   :  { %p1579_p13 = por %p1578_p12, %p1577_p11 }
  0x1e   :  { %p1580_p0 = pnand %p1579_p13, %p1573_p10 }
  0x20   :  { %1583 = shalt.err (!%p1580_p0)
}
  0x21   :  { %50 = dma.hbm_to_vmem [thread:$0]  %s2030_s3, 2048, %s45_s6, [#allocation6], %s1612_s23, %s1612_s23, %s1613_s24  }
  0x22   :  { %1604 = dma.done.wait [#allocation3], 2048  }
  0x23   :  { %1605 = vsyncadd [#allocation3], 4294965248 }
  0x24   :  { %1606 = dma.done.wait [#allocation6], 4096  }
  0x25   :  { %1607 = vsyncadd [#allocation6], 4294963200  ;;  %v1615_v0 = vmov 0   ;;  %v1616_v1 = vmov 0.0   ;;  %v62_v2 = vld [vmem:[%s2027_s0] sm:$0xff]  ;;  %v64_v3 = vld [vmem:[%s2027_s0 + $0x10] sm:$0xff]  ;;  %v70_v42 = vlaneseq }
  0x26   :  { %1506 = vset.pattern.permute.xlu0 %v1615_v0  ;;  %1507 = vset.pattern.permute.xlu1 %v1615_v0  ;;  %v63_v4 = vld [vmem:[%s2027_s0 + $0x8] sm:$0xff]  ;;  %v65_v5 = vld [vmem:[%s2027_s0 + $0x18] sm:$0xff]  ;;  %vm1617_vm0 = vmmov 0   ;;  %v134_v8 = vld [vmem:[#allocation2 + $0x70] sm:$0xff]  ;;  %v1618_v46 = vmov 1.0   ;;  %s1619_s24 = smov [#allocation8]  }
  0x27   :  { %1181 = vmatprep.subr.mxu1 %v1616_v1  ;;  %73 = vperm.xlu0 %1506, %v62_v2   ;;  %v135_v6 = vld [vmem:[#allocation2 + $0x78] sm:$0xff]  ;;  %v1677_v9 = vld [vmem:[#allocation5 + $0x70] sm:$0xff]  ;;  %v133_v10 = vld [vmem:[#allocation2 + $0x68] sm:$0xff]  ;;  %v71_v43 = vand.u32 127, %v70_v42  ;;  %s933_s25 = sshll.u32 %s1619_s24, 4  ;;  %s934_s25 = int_to_ptr.vmem [resolvable:$true] %s933_s25 }
  0x28   :  { %79 = vperm.xlu1 %1507, %v64_v3   ;;  %v1672_v7 = vld [vmem:[#allocation5 + $0x78] sm:$0xff]  ;;  %1213 = vmatprep.mubr.msk.f32.mxu1 %vm1617_vm0, %v1616_v1  ;;  %v1680_v11 = vld [vmem:[#allocation5 + $0x68] sm:$0xff]  ;;  %v66_v12 = vld [vmem:[%s2027_s0 + $0x20] sm:$0xff]  ;;  %s1584_s26 = scalar_lea.vmem %s934_s25, 128  ;;  %p1589_p2 = scmp.lt.s32.totalorder %s934_s25, %s934_s25 }
  0x29   :  { %1137 = vmatprep.subr.mxu0 %v135_v6  ;;  %1182 = vmatpush3.msra.mxu1 %v1672_v7  ;;  %v67_v13 = vld [vmem:[%s2027_s0 + $0x28] sm:$0xff]  ;;  %v132_v14 = vld [vmem:[#allocation2 + $0x60] sm:$0xff]  ;;  %v68_v16 = vld [vmem:[%s2027_s0 + $0x30] sm:$0xff]  ;;  %p1585_p1 = scmp.ne.s32.totalorder %s934_s25, %s1584_s26  ;;  %p1590_p3 = scmp.lt.s32.totalorder %s1584_s26, %s1584_s26 }
  0x2a   :  { %1138 = vmatpush3.msra.mxu0 %v135_v6  ;;  %1183 = vmatprep.subr.mxu1 %v1616_v1  ;;  %v1691_v15 = vld [vmem:[#allocation5 + $0x60] sm:$0xff]  ;;  %v131_v17 = vld [vmem:[#allocation2 + $0x58] sm:$0xff]  ;;  %v130_v19 = vld [vmem:[#allocation2 + $0x50] sm:$0xff] }
  0x2b   :  { %76 = vperm.xlu0 %1506, %v63_v4   ;;  %1139 = vmatprep.subr.mxu0 %v134_v8  ;;  %v1698_v18 = vld [vmem:[#allocation5 + $0x58] sm:$0xff]  ;;  %v1701_v20 = vld [vmem:[#allocation5 + $0x50] sm:$0xff]  ;;  %v129_v21 = vld [vmem:[#allocation2 + $0x48] sm:$0xff]  ;;  %p1591_p4 = por %p1590_p3, %p1589_p2 }
  0x2c   :  { %82 = vperm.xlu1 %1507, %v65_v5   ;;  %1184 = vmatpush3.msra.mxu1 %v1677_v9  ;;  %v1705_v22 = vld [vmem:[#allocation5 + $0x48] sm:$0xff]  ;;  %v128_v23 = vld [vmem:[#allocation2 + $0x40] sm:$0xff]  ;;  %v127_v25 = vld [vmem:[#allocation2 + $0x38] sm:$0xff] }
  0x2d   :  { %1140 = vmatpush3.msra.mxu0 %v134_v8  ;;  %1185 = vmatprep.subr.mxu1 %v1616_v1  ;;  %v1709_v24 = vld [vmem:[#allocation5 + $0x40] sm:$0xff]  ;;  %v1713_v26 = vld [vmem:[#allocation5 + $0x38] sm:$0xff]  ;;  %v126_v27 = vld [vmem:[#allocation2 + $0x30] sm:$0xff]  ;;  %p1592_p5 = pnand %p1591_p4, %p1585_p1 }
  0x2e   :  { %1141 = vmatprep.subr.mxu0 %v133_v10  ;;  %1186 = vmatpush3.msra.mxu1 %v1680_v11  ;;  %v1717_v28 = vld [vmem:[#allocation5 + $0x30] sm:$0xff]  ;;  %v125_v29 = vld [vmem:[#allocation2 + $0x28] sm:$0xff]  ;;  %v124_v31 = vld [vmem:[#allocation2 + $0x20] sm:$0xff] }
  0x2f   :  { %85 = vperm.xlu0 %1506, %v66_v12   ;;  %1142 = vmatpush3.msra.mxu0 %v133_v10  ;;  %v1721_v30 = vld [vmem:[#allocation5 + $0x28] sm:$0xff]  ;;  %v1725_v32 = vld [vmem:[#allocation5 + $0x20] sm:$0xff]  ;;  %v123_v33 = vld [vmem:[#allocation2 + $0x18] sm:$0xff] }
  0x30   :  { %88 = vperm.xlu1 %1507, %v67_v13   ;;  %1187 = vmatprep.subr.mxu1 %v1616_v1  ;;  %v1729_v34 = vld [vmem:[#allocation5 + $0x18] sm:$0xff]  ;;  %v122_v35 = vld [vmem:[#allocation2 + $0x10] sm:$0xff]  ;;  %v121_v37 = vld [vmem:[#allocation2 + $0x8] sm:$0xff] }
  0x31   :  { %1143 = vmatprep.subr.mxu0 %v132_v14  ;;  %1188 = vmatpush3.msra.mxu1 %v1691_v15  ;;  %v1733_v36 = vld [vmem:[#allocation5 + $0x10] sm:$0xff]  ;;  %v1737_v38 = vld [vmem:[#allocation5 + $0x8] sm:$0xff]  ;;  %v120_v39 = vld [vmem:[#allocation2] sm:$0xff] }
  0x32   :  { %1144 = vmatpush3.msra.mxu0 %v132_v14  ;;  %1189 = vmatprep.subr.mxu1 %v1616_v1  ;;  %v1741_v40 = vld [vmem:[#allocation5] sm:$0xff]  ;;  %v69_v41 = vld [vmem:[%s2027_s0 + $0x38] sm:$0xff] }
  0x33   :  { %91 = vperm.xlu0 %1506, %v68_v16   ;;  %1145 = vmatprep.subr.mxu0 %v131_v17 }
  0x34   :  { %1146 = vmatpush3.msra.mxu0 %v131_v17  ;;  %1190 = vmatpush3.msra.mxu1 %v1698_v18 }
  0x35   :  { %1147 = vmatprep.subr.mxu0 %v130_v19  ;;  %1191 = vmatprep.subr.mxu1 %v1616_v1 }
  0x36   :  { %1148 = vmatpush3.msra.mxu0 %v130_v19  ;;  %1192 = vmatpush3.msra.mxu1 %v1701_v20 }
  0x37   :  { %1149 = vmatprep.subr.mxu0 %v129_v21  ;;  %1193 = vmatprep.subr.mxu1 %v1616_v1 }
  0x38   :  { %1150 = vmatpush3.msra.mxu0 %v129_v21  ;;  %1194 = vmatpush3.msra.mxu1 %v1705_v22 }
  0x39   :  { %1151 = vmatprep.subr.mxu0 %v128_v23  ;;  %1195 = vmatprep.subr.mxu1 %v1616_v1 }
  0x3a   :  { %1152 = vmatpush3.msra.mxu0 %v128_v23  ;;  %1196 = vmatpush3.msra.mxu1 %v1709_v24 }
  0x3b   :  { %1153 = vmatprep.subr.mxu0 %v127_v25  ;;  %1197 = vmatprep.subr.mxu1 %v1616_v1 }
  0x3c   :  { %1154 = vmatpush3.msra.mxu0 %v127_v25  ;;  %1198 = vmatpush3.msra.mxu1 %v1713_v26 }
  0x3d   :  { %1155 = vmatprep.subr.mxu0 %v126_v27  ;;  %1199 = vmatprep.subr.mxu1 %v1616_v1 }
  0x3e   :  { %1156 = vmatpush3.msra.mxu0 %v126_v27  ;;  %1200 = vmatpush3.msra.mxu1 %v1717_v28  ;;  %v843_v27 = vld [vmem:[#allocation7 + $0x50] sm:$0xff] }
  0x3f   :  { %1157 = vmatprep.subr.mxu0 %v125_v29  ;;  %1201 = vmatprep.subr.mxu1 %v1616_v1 }
  0x40   :  { %1158 = vmatpush3.msra.mxu0 %v125_v29  ;;  %1202 = vmatpush3.msra.mxu1 %v1721_v30 }
  0x41   :  { %1159 = vmatprep.subr.mxu0 %v124_v31  ;;  %1203 = vmatprep.subr.mxu1 %v1616_v1 }
  0x42   :  { %1160 = vmatpush3.msra.mxu0 %v124_v31  ;;  %1204 = vmatpush3.msra.mxu1 %v1725_v32 }
  0x43   :  { %1161 = vmatprep.subr.mxu0 %v123_v33  ;;  %1205 = vmatprep.subr.mxu1 %v1616_v1 }
  0x44   :  { %1162 = vmatpush3.msra.mxu0 %v123_v33  ;;  %1206 = vmatpush3.msra.mxu1 %v1729_v34  ;;  %v841_v33 = vld [vmem:[#allocation7 + $0x40] sm:$0xff] }
  0x45   :  { %1163 = vmatprep.subr.mxu0 %v122_v35  ;;  %1207 = vmatprep.subr.mxu1 %v1616_v1 }
  0x46   :  { %1164 = vmatpush3.msra.mxu0 %v122_v35  ;;  %1208 = vmatpush3.msra.mxu1 %v1733_v36  ;;  %v839_v35 = vld [vmem:[#allocation7 + $0x30] sm:$0xff] }
  0x47   :  { %1165 = vmatprep.subr.mxu0 %v121_v37  ;;  %1209 = vmatprep.subr.mxu1 %v1616_v1 }
  0x48   :  { %1166 = vmatpush3.msra.mxu0 %v121_v37  ;;  %1210 = vmatpush3.msra.mxu1 %v1737_v38  ;;  %v837_v37 = vld [vmem:[#allocation7 + $0x20] sm:$0xff] }
  0x49   :  { %1167 = vmatprep.subr.mxu0 %v120_v39  ;;  %1211 = vmatprep.subr.mxu1 %v1616_v1 }
  0x4a   :  { %1168 = vmatpush3.msra.mxu0 %v120_v39  ;;  %1212 = vmatpush3.msra.mxu1 %v1741_v40  ;;  %v835_v39 = vld [vmem:[#allocation7 + $0x10] sm:$0xff] }
  0x4b   :  { %1214 = vmatmul.mubr.f32.vlgmr.msra.gmra.mxu1 %v1616_v1  ;;  %94 = vperm.xlu1 %1507, %v69_v41   ;;  %v833_v41 = vld [vmem:[#allocation7] sm:$0xff] }
  0x4c   :  { %1216 = vmatprep.subr.mxu0 %v1616_v1  ;;  %1251 = vmatprep.subr.mxu1 %v1616_v1 }
  0x4d   :  { %1252 = vmatpush3.msra.mxu1 %v1672_v7  ;;  %1283 = vmatprep.mubr.msk.f32.mxu1 %vm1617_vm0, %v1616_v1 }
  0x4e   :  { %1253 = vmatprep.subr.mxu1 %v1616_v1 }
  0x4f   :  { %1254 = vmatpush3.msra.mxu1 %v1677_v9 }
  0x50   :  { %1255 = vmatprep.subr.mxu1 %v1616_v1 }
  0x51   :  { %1256 = vmatpush3.msra.mxu1 %v1680_v11 }
  0x52   :  { %1257 = vmatprep.subr.mxu1 %v1616_v1 }
  0x53   :  { %1258 = vmatpush3.msra.mxu1 %v1691_v15 }
  0x54   :  { %1259 = vmatprep.subr.mxu1 %v1616_v1 }
  0x55   :  { %1260 = vmatpush3.msra.mxu1 %v1698_v18 }
  0x56   :  { %1261 = vmatprep.subr.mxu1 %v1616_v1 }
  0x57   :  { %1262 = vmatpush3.msra.mxu1 %v1701_v20 }
  0x58   :  { %1263 = vmatprep.subr.mxu1 %v1616_v1 }
  0x59   :  { %1264 = vmatpush3.msra.mxu1 %v1705_v22 }
  0x5a   :  { %1265 = vmatprep.subr.mxu1 %v1616_v1 }
  0x5b   :  { %1266 = vmatpush3.msra.mxu1 %v1709_v24 }
  0x5c   :  { %1267 = vmatprep.subr.mxu1 %v1616_v1 }
  0x5d   :  { %1268 = vmatpush3.msra.mxu1 %v1713_v26 }
  0x5e   :  { %1269 = vmatprep.subr.mxu1 %v1616_v1 }
  0x5f   :  { %1270 = vmatpush3.msra.mxu1 %v1717_v28 }
  0x60   :  { %1271 = vmatprep.subr.mxu1 %v1616_v1 }
  0x61   :  { %1272 = vmatpush3.msra.mxu1 %v1721_v30 }
  0x62   :  { %1273 = vmatprep.subr.mxu1 %v1616_v1 }
  0x63   :  { %1274 = vmatpush3.msra.mxu1 %v1725_v32 }
  0x64   :  { %1275 = vmatprep.subr.mxu1 %v1616_v1 }
  0x65   :  { %1276 = vmatpush3.msra.mxu1 %v1729_v34 }
  0x66   :  { %1277 = vmatprep.subr.mxu1 %v1616_v1 }
  0x67   :  { %1278 = vmatpush3.msra.mxu1 %v1733_v36 }
  0x68   :  { %1279 = vmatprep.subr.mxu1 %v1616_v1 }
  0x69   :  { %1280 = vmatpush3.msra.mxu1 %v1737_v38 }
  0x6a   :  { %1281 = vmatprep.subr.mxu1 %v1616_v1 }
  0x6b   :  { %1282 = vmatpush3.msra.mxu1 %v1741_v40 }
  0x6c   :  { %1321 = vmatprep.subr.mxu1 %v1616_v1 }
  0xa2   :  { %v74_v44 = vpop.permute.xlu0 %73 }
  0xa3   :  { %v80_v45 = vpop.permute.xlu1 %79  ;;  %vm96_vm1 = vcmp.eq.s32.totalorder %v71_v43, %v74_v44 }
  0xa4   :  { %1169 = vmatprep.mubr.msk.f32.mxu0 %vm96_vm1, %v1618_v46  ;;  %vm98_vm2 = vcmp.eq.s32.totalorder %v71_v43, %v80_v45 }
  0xa6   :  { %v77_v47 = vpop.permute.xlu0 %76 }
  0xa7   :  { %v83_v48 = vpop.permute.xlu1 %82  ;;  %vm97_vm3 = vcmp.eq.s32.totalorder %v71_v43, %v77_v47 }
  0xa8   :  { %1170 = vmatmul.mubr.msk.f32.vlgmr.msra.gmra.mxu0 %vm97_vm3, %v1618_v46  ;;  %vm99_vm4 = vcmp.eq.s32.totalorder %v71_v43, %v83_v48 }
  0xa9   :  { %1172 = vmatprep.mubr.msk.f32.mxu0 %vm98_vm2, %v1618_v46  ;;  %1217 = vmatpush3.msra.mxu0 %v1672_v7 }
  0xaa   :  { %v86_v49 = vpop.permute.xlu0 %85  ;;  %1218 = vmatprep.subr.mxu0 %v1616_v1 }
  0xab   :  { %v89_v50 = vpop.permute.xlu1 %88  ;;  %vm100_vm5 = vcmp.eq.s32.totalorder %v71_v43, %v86_v49  ;;  %1219 = vmatpush3.msra.mxu0 %v1677_v9 }
  0xac   :  { %1173 = vmatmul.mubr.msk.f32.gmra.mxu0 %vm99_vm4, %v1618_v46  ;;  %1220 = vmatprep.subr.mxu0 %v1616_v1  ;;  %vm101_vm6 = vcmp.eq.s32.totalorder %v71_v43, %v89_v50 }
  0xad   :  { %1175 = vmatprep.mubr.msk.f32.mxu0 %vm100_vm5, %v1618_v46  ;;  %1221 = vmatpush3.msra.mxu0 %v1680_v11 }
  0xae   :  { %v92_v51 = vpop.permute.xlu0 %91  ;;  %1222 = vmatprep.subr.mxu0 %v1616_v1 }
  0xaf   :  { %vm102_vm7 = vcmp.eq.s32.totalorder %v71_v43, %v92_v51  ;;  %1223 = vmatpush3.msra.mxu0 %v1691_v15 }
  0xb0   :  { %1176 = vmatmul.mubr.msk.f32.gmra.mxu0 %vm101_vm6, %v1618_v46  ;;  %1224 = vmatprep.subr.mxu0 %v1616_v1 }
  0xb1   :  { %1178 = vmatprep.mubr.msk.f32.mxu0 %vm102_vm7, %v1618_v46  ;;  %1225 = vmatpush3.msra.mxu0 %v1698_v18 }
  0xb2   :  { %1226 = vmatprep.subr.mxu0 %v1616_v1 }
  0xb3   :  { %1227 = vmatpush3.msra.mxu0 %v1701_v20 }
  0xb4   :  { %1228 = vmatprep.subr.mxu0 %v1616_v1 }
  0xb5   :  { %1229 = vmatpush3.msra.mxu0 %v1705_v22 }
  0xb6   :  { %1230 = vmatprep.subr.mxu0 %v1616_v1 }
  0xb7   :  { %1231 = vmatpush3.msra.mxu0 %v1709_v24 }
  0xb8   :  { %1232 = vmatprep.subr.mxu0 %v1616_v1 }
  0xb9   :  { %1233 = vmatpush3.msra.mxu0 %v1713_v26 }
  0xba   :  { %1234 = vmatprep.subr.mxu0 %v1616_v1 }
  0xbb   :  { %1235 = vmatpush3.msra.mxu0 %v1717_v28 }
  0xbc   :  { %1236 = vmatprep.subr.mxu0 %v1616_v1 }
  0xbd   :  { %1237 = vmatpush3.msra.mxu0 %v1721_v30 }
  0xbe   :  { %1238 = vmatprep.subr.mxu0 %v1616_v1 }
  0xbf   :  { %1239 = vmatpush3.msra.mxu0 %v1725_v32 }
  0xc0   :  { %1240 = vmatprep.subr.mxu0 %v1616_v1 }
  0xc1   :  { %1241 = vmatpush3.msra.mxu0 %v1729_v34 }
  0xc2   :  { %1242 = vmatprep.subr.mxu0 %v1616_v1 }
  0xc3   :  { %1243 = vmatpush3.msra.mxu0 %v1733_v36 }
  0xc4   :  { %1244 = vmatprep.subr.mxu0 %v1616_v1 }
  0xc5   :  { %1245 = vmatpush3.msra.mxu0 %v1737_v38 }
  0xc6   :  { %v95_v52 = vpop.permute.xlu1 %94  ;;  %1246 = vmatprep.subr.mxu0 %v1616_v1 }
  0xc7   :  { %vm103_vm8 = vcmp.eq.s32.totalorder %v71_v43, %v95_v52  ;;  %1247 = vmatpush3.msra.mxu0 %v1741_v40 }
  0xc8   :  { %1179 = vmatmul.mubr.msk.f32.gmra.mxu0 %vm103_vm8, %v1618_v46  ;;  %1286 = vmatprep.subr.mxu0 %v1616_v1  ;;  %v959_v46 = vld [vmem:[%s2031_s4] ss:$0 sm:$0xff] }
  0xc9   :  { %1248 = vmatprep.mubr.msk.f32.mxu0 %vm1617_vm0, %v1616_v1 }
 0x10b   :  { %v323_v53 = vpop.f32.mrf.mxu1 }
 0x10d   :  { %v1215_v54 = vpop.f32.mrf.mxu1 }
 0x168   :  { %v1171_v55 = vpop.f32.mrf.mxu0 }
 0x16a   :  { %v202_v56 = vpop.f32.mrf.mxu0 }
 0x16b   :  { %v327_v57 = vadd.f32 %v323_v53, %v202_v56 }
 0x16c   :  { %v1854_v59 = vpop.f32.mrf.mxu0 }
 0x16d   :  { %1508 = vtanh.f32 %v327_v57 }
 0x16e   :  { %v212_v60 = vpop.f32.mrf.mxu0 }
 0x170   :  { %v1856_v61 = vpop.f32.mrf.mxu0 }
 0x172   :  { %v1858_v62 = vpop.f32.mrf.mxu0 }
 0x17a   :  { %v1509_v58 = vpop.eup %1508 }
 0x17b   :  { %1249 = vmatmul.mubr.f32.vlgmr.msra.gmra.mxu0 %v1509_v58 }
 0x17c   :  { %1287 = vmatpush3.msra.mxu0 %v1672_v7  ;;  %1318 = vmatprep.mubr.msk.f32.mxu0 %vm1617_vm0, %v1616_v1 }
 0x17d   :  { %1288 = vmatprep.subr.mxu0 %v1616_v1 }
 0x17e   :  { %1289 = vmatpush3.msra.mxu0 %v1677_v9 }
 0x17f   :  { %1290 = vmatprep.subr.mxu0 %v1616_v1 }
 0x180   :  { %1291 = vmatpush3.msra.mxu0 %v1680_v11 }
 0x181   :  { %1292 = vmatprep.subr.mxu0 %v1616_v1 }
 0x182   :  { %1293 = vmatpush3.msra.mxu0 %v1691_v15 }
 0x183   :  { %1294 = vmatprep.subr.mxu0 %v1616_v1 }
 0x184   :  { %1295 = vmatpush3.msra.mxu0 %v1698_v18 }
 0x185   :  { %1296 = vmatprep.subr.mxu0 %v1616_v1 }
 0x186   :  { %1297 = vmatpush3.msra.mxu0 %v1701_v20 }
 0x187   :  { %1298 = vmatprep.subr.mxu0 %v1616_v1 }
 0x188   :  { %1299 = vmatpush3.msra.mxu0 %v1705_v22  ;;  %v1860_v63 = vpop.f32.mrf.mxu0 }
 0x189   :  { %1300 = vmatprep.subr.mxu0 %v1616_v1 }
 0x18a   :  { %1301 = vmatpush3.msra.mxu0 %v1709_v24  ;;  %v1862_v0 = vpop.f32.mrf.mxu0 }
 0x18b   :  { %1302 = vmatprep.subr.mxu0 %v1616_v1 }
 0x18c   :  { %1303 = vmatpush3.msra.mxu0 %v1713_v26 }
 0x18d   :  { %1304 = vmatprep.subr.mxu0 %v1616_v1 }
 0x18e   :  { %1305 = vmatpush3.msra.mxu0 %v1717_v28 }
 0x18f   :  { %1306 = vmatprep.subr.mxu0 %v1616_v1 }
 0x190   :  { %1307 = vmatpush3.msra.mxu0 %v1721_v30 }
 0x191   :  { %1308 = vmatprep.subr.mxu0 %v1616_v1 }
 0x192   :  { %1309 = vmatpush3.msra.mxu0 %v1725_v32 }
 0x193   :  { %1310 = vmatprep.subr.mxu0 %v1616_v1 }
 0x194   :  { %1311 = vmatpush3.msra.mxu0 %v1729_v34 }
 0x195   :  { %1312 = vmatprep.subr.mxu0 %v1616_v1 }
 0x196   :  { %1313 = vmatpush3.msra.mxu0 %v1733_v36 }
 0x197   :  { %1314 = vmatprep.subr.mxu0 %v1616_v1 }
 0x198   :  { %1315 = vmatpush3.msra.mxu0 %v1737_v38 }
 0x199   :  { %1316 = vmatprep.subr.mxu0 %v1616_v1 }
 0x19a   :  { %1317 = vmatpush3.msra.mxu0 %v1741_v40 }
 0x19b   :  { %1356 = vmatprep.subr.mxu0 %v1616_v1 }
 0x23b   :  { %v395_v2 = vpop.f32.mrf.mxu0 }
 0x23c   :  { %v399_v3 = vadd.f32 %v1171_v55, %v395_v2 }
 0x23d   :  { %v1250_v4 = vpop.f32.mrf.mxu0 }
 0x23e   :  { %1510 = vtanh.f32 %v399_v3 }
 0x24b   :  { %v1511_v5 = vpop.eup %1510 }
 0x24c   :  { %1284 = vmatmul.mubr.f32.vlgmr.msra.gmra.mxu1 %v1511_v5 }
 0x24d   :  { %1322 = vmatpush3.msra.mxu1 %v1672_v7  ;;  %1353 = vmatprep.mubr.msk.f32.mxu1 %vm1617_vm0, %v1616_v1 }
 0x24e   :  { %1323 = vmatprep.subr.mxu1 %v1616_v1 }
 0x24f   :  { %1324 = vmatpush3.msra.mxu1 %v1677_v9 }
 0x250   :  { %1325 = vmatprep.subr.mxu1 %v1616_v1 }
 0x251   :  { %1326 = vmatpush3.msra.mxu1 %v1680_v11 }
 0x252   :  { %1327 = vmatprep.subr.mxu1 %v1616_v1 }
 0x253   :  { %1328 = vmatpush3.msra.mxu1 %v1691_v15 }
 0x254   :  { %1329 = vmatprep.subr.mxu1 %v1616_v1 }
 0x255   :  { %1330 = vmatpush3.msra.mxu1 %v1698_v18 }
 0x256   :  { %1331 = vmatprep.subr.mxu1 %v1616_v1 }
 0x257   :  { %1332 = vmatpush3.msra.mxu1 %v1701_v20 }
 0x258   :  { %1333 = vmatprep.subr.mxu1 %v1616_v1 }
 0x259   :  { %1334 = vmatpush3.msra.mxu1 %v1705_v22 }
 0x25a   :  { %1335 = vmatprep.subr.mxu1 %v1616_v1 }
 0x25b   :  { %1336 = vmatpush3.msra.mxu1 %v1709_v24 }
 0x25c   :  { %1337 = vmatprep.subr.mxu1 %v1616_v1 }
 0x25d   :  { %1338 = vmatpush3.msra.mxu1 %v1713_v26 }
 0x25e   :  { %1339 = vmatprep.subr.mxu1 %v1616_v1 }
 0x25f   :  { %1340 = vmatpush3.msra.mxu1 %v1717_v28 }
 0x260   :  { %1341 = vmatprep.subr.mxu1 %v1616_v1 }
 0x261   :  { %1342 = vmatpush3.msra.mxu1 %v1721_v30 }
 0x262   :  { %1343 = vmatprep.subr.mxu1 %v1616_v1 }
 0x263   :  { %1344 = vmatpush3.msra.mxu1 %v1725_v32 }
 0x264   :  { %1345 = vmatprep.subr.mxu1 %v1616_v1 }
 0x265   :  { %1346 = vmatpush3.msra.mxu1 %v1729_v34 }
 0x266   :  { %1347 = vmatprep.subr.mxu1 %v1616_v1 }
 0x267   :  { %1348 = vmatpush3.msra.mxu1 %v1733_v36 }
 0x268   :  { %1349 = vmatprep.subr.mxu1 %v1616_v1 }
 0x269   :  { %1350 = vmatpush3.msra.mxu1 %v1737_v38 }
 0x26a   :  { %1351 = vmatprep.subr.mxu1 %v1616_v1 }
 0x26b   :  { %1352 = vmatpush3.msra.mxu1 %v1741_v40 }
 0x26c   :  { %1391 = vmatprep.subr.mxu1 %v1616_v1 }
 0x30c   :  { %v467_v6 = vpop.f32.mrf.mxu1 }
 0x30d   :  { %v471_v8 = vadd.f32 %v467_v6, %v212_v60 }
 0x30e   :  { %v1285_v10 = vpop.f32.mrf.mxu1 }
 0x30f   :  { %1512 = vtanh.f32 %v471_v8 }
 0x31c   :  { %v1513_v12 = vpop.eup %1512 }
 0x31d   :  { %1319 = vmatmul.mubr.f32.vlgmr.msra.gmra.mxu0 %v1513_v12 }
 0x31e   :  { %1357 = vmatpush3.msra.mxu0 %v1672_v7  ;;  %1388 = vmatprep.mubr.msk.f32.mxu0 %vm1617_vm0, %v1616_v1 }
 0x31f   :  { %1358 = vmatprep.subr.mxu0 %v1616_v1 }
 0x320   :  { %1359 = vmatpush3.msra.mxu0 %v1677_v9 }
 0x321   :  { %1360 = vmatprep.subr.mxu0 %v1616_v1 }
 0x322   :  { %1361 = vmatpush3.msra.mxu0 %v1680_v11 }
 0x323   :  { %1362 = vmatprep.subr.mxu0 %v1616_v1 }
 0x324   :  { %1363 = vmatpush3.msra.mxu0 %v1691_v15 }
 0x325   :  { %1364 = vmatprep.subr.mxu0 %v1616_v1 }
 0x326   :  { %1365 = vmatpush3.msra.mxu0 %v1698_v18 }
 0x327   :  { %1366 = vmatprep.subr.mxu0 %v1616_v1 }
 0x328   :  { %1367 = vmatpush3.msra.mxu0 %v1701_v20 }
 0x329   :  { %1368 = vmatprep.subr.mxu0 %v1616_v1 }
 0x32a   :  { %1369 = vmatpush3.msra.mxu0 %v1705_v22 }
 0x32b   :  { %1370 = vmatprep.subr.mxu0 %v1616_v1 }
 0x32c   :  { %1371 = vmatpush3.msra.mxu0 %v1709_v24 }
 0x32d   :  { %1372 = vmatprep.subr.mxu0 %v1616_v1 }
 0x32e   :  { %1373 = vmatpush3.msra.mxu0 %v1713_v26 }
 0x32f   :  { %1374 = vmatprep.subr.mxu0 %v1616_v1 }
 0x330   :  { %1375 = vmatpush3.msra.mxu0 %v1717_v28 }
 0x331   :  { %1376 = vmatprep.subr.mxu0 %v1616_v1 }
 0x332   :  { %1377 = vmatpush3.msra.mxu0 %v1721_v30 }
 0x333   :  { %1378 = vmatprep.subr.mxu0 %v1616_v1 }
 0x334   :  { %1379 = vmatpush3.msra.mxu0 %v1725_v32 }
 0x335   :  { %1380 = vmatprep.subr.mxu0 %v1616_v1 }
 0x336   :  { %1381 = vmatpush3.msra.mxu0 %v1729_v34 }
 0x337   :  { %1382 = vmatprep.subr.mxu0 %v1616_v1 }
 0x338   :  { %1383 = vmatpush3.msra.mxu0 %v1733_v36 }
 0x339   :  { %1384 = vmatprep.subr.mxu0 %v1616_v1 }
 0x33a   :  { %1385 = vmatpush3.msra.mxu0 %v1737_v38 }
 0x33b   :  { %1386 = vmatprep.subr.mxu0 %v1616_v1 }
 0x33c   :  { %1387 = vmatpush3.msra.mxu0 %v1741_v40 }
 0x33d   :  { %1426 = vmatprep.subr.mxu0 %v1616_v1 }
 0x3dd   :  { %v539_v13 = vpop.f32.mrf.mxu0 }
 0x3de   :  { %v543_v14 = vadd.f32 %v1854_v59, %v539_v13 }
 0x3df   :  { %v1320_v16 = vpop.f32.mrf.mxu0 }
 0x3e0   :  { %1514 = vtanh.f32 %v543_v14 }
 0x3ed   :  { %v1515_v17 = vpop.eup %1514 }
 0x3ee   :  { %1354 = vmatmul.mubr.f32.vlgmr.msra.gmra.mxu1 %v1515_v17 }
 0x3ef   :  { %1392 = vmatpush3.msra.mxu1 %v1672_v7  ;;  %1423 = vmatprep.mubr.msk.f32.mxu1 %vm1617_vm0, %v1616_v1 }
 0x3f0   :  { %1393 = vmatprep.subr.mxu1 %v1616_v1 }
 0x3f1   :  { %1394 = vmatpush3.msra.mxu1 %v1677_v9 }
 0x3f2   :  { %1395 = vmatprep.subr.mxu1 %v1616_v1 }
 0x3f3   :  { %1396 = vmatpush3.msra.mxu1 %v1680_v11 }
 0x3f4   :  { %1397 = vmatprep.subr.mxu1 %v1616_v1 }
 0x3f5   :  { %1398 = vmatpush3.msra.mxu1 %v1691_v15 }
 0x3f6   :  { %1399 = vmatprep.subr.mxu1 %v1616_v1 }
 0x3f7   :  { %1400 = vmatpush3.msra.mxu1 %v1698_v18 }
 0x3f8   :  { %1401 = vmatprep.subr.mxu1 %v1616_v1 }
 0x3f9   :  { %1402 = vmatpush3.msra.mxu1 %v1701_v20 }
 0x3fa   :  { %1403 = vmatprep.subr.mxu1 %v1616_v1 }
 0x3fb   :  { %1404 = vmatpush3.msra.mxu1 %v1705_v22 }
 0x3fc   :  { %1405 = vmatprep.subr.mxu1 %v1616_v1 }
 0x3fd   :  { %1406 = vmatpush3.msra.mxu1 %v1709_v24 }
 0x3fe   :  { %1407 = vmatprep.subr.mxu1 %v1616_v1 }
 0x3ff   :  { %1408 = vmatpush3.msra.mxu1 %v1713_v26 }
 0x400   :  { %1409 = vmatprep.subr.mxu1 %v1616_v1 }
 0x401   :  { %1410 = vmatpush3.msra.mxu1 %v1717_v28 }
 0x402   :  { %1411 = vmatprep.subr.mxu1 %v1616_v1 }
 0x403   :  { %1412 = vmatpush3.msra.mxu1 %v1721_v30 }
 0x404   :  { %1413 = vmatprep.subr.mxu1 %v1616_v1 }
 0x405   :  { %1414 = vmatpush3.msra.mxu1 %v1725_v32 }
 0x406   :  { %1415 = vmatprep.subr.mxu1 %v1616_v1 }
 0x407   :  { %1416 = vmatpush3.msra.mxu1 %v1729_v34 }
 0x408   :  { %1417 = vmatprep.subr.mxu1 %v1616_v1 }
 0x409   :  { %1418 = vmatpush3.msra.mxu1 %v1733_v36 }
 0x40a   :  { %1419 = vmatprep.subr.mxu1 %v1616_v1 }
 0x40b   :  { %1420 = vmatpush3.msra.mxu1 %v1737_v38 }
 0x40c   :  { %1421 = vmatprep.subr.mxu1 %v1616_v1 }
 0x40d   :  { %1422 = vmatpush3.msra.mxu1 %v1741_v40 }
 0x40e   :  { %1461 = vmatprep.subr.mxu1 %v1616_v1 }
 0x4ae   :  { %v611_v19 = vpop.f32.mrf.mxu1 }
 0x4af   :  { %v615_v21 = vadd.f32 %v611_v19, %v1858_v62 }
 0x4b0   :  { %v1355_v23 = vpop.f32.mrf.mxu1 }
 0x4b1   :  { %1516 = vtanh.f32 %v615_v21 }
 0x4be   :  { %v1517_v25 = vpop.eup %1516 }
 0x4bf   :  { %1389 = vmatmul.mubr.f32.vlgmr.msra.gmra.mxu0 %v1517_v25 }
 0x4c0   :  { %1427 = vmatpush3.msra.mxu0 %v1672_v7  ;;  %1458 = vmatprep.mubr.msk.f32.mxu0 %vm1617_vm0, %v1616_v1 }
 0x4c1   :  { %1428 = vmatprep.subr.mxu0 %v1616_v1 }
 0x4c2   :  { %1429 = vmatpush3.msra.mxu0 %v1677_v9 }
 0x4c3   :  { %1430 = vmatprep.subr.mxu0 %v1616_v1 }
 0x4c4   :  { %1431 = vmatpush3.msra.mxu0 %v1680_v11 }
 0x4c5   :  { %1432 = vmatprep.subr.mxu0 %v1616_v1 }
 0x4c6   :  { %1433 = vmatpush3.msra.mxu0 %v1691_v15 }
 0x4c7   :  { %1434 = vmatprep.subr.mxu0 %v1616_v1 }
 0x4c8   :  { %1435 = vmatpush3.msra.mxu0 %v1698_v18  ;;  %v848_v18 = vld [vmem:[#allocation7 + $0x78] sm:$0xff] }
 0x4c9   :  { %1436 = vmatprep.subr.mxu0 %v1616_v1 }
 0x4ca   :  { %1437 = vmatpush3.msra.mxu0 %v1701_v20  ;;  %v847_v20 = vld [vmem:[#allocation7 + $0x70] sm:$0xff] }
 0x4cb   :  { %1438 = vmatprep.subr.mxu0 %v1616_v1 }
 0x4cc   :  { %1439 = vmatpush3.msra.mxu0 %v1705_v22  ;;  %v846_v22 = vld [vmem:[#allocation7 + $0x68] sm:$0xff] }
 0x4cd   :  { %1440 = vmatprep.subr.mxu0 %v1616_v1 }
 0x4ce   :  { %1441 = vmatpush3.msra.mxu0 %v1709_v24  ;;  %v845_v24 = vld [vmem:[#allocation7 + $0x60] sm:$0xff] }
 0x4cf   :  { %1442 = vmatprep.subr.mxu0 %v1616_v1 }
 0x4d0   :  { %1443 = vmatpush3.msra.mxu0 %v1713_v26  ;;  %v844_v26 = vld [vmem:[#allocation7 + $0x58] sm:$0xff] }
 0x4d1   :  { %1444 = vmatprep.subr.mxu0 %v1616_v1 }
 0x4d2   :  { %1445 = vmatpush3.msra.mxu0 %v1717_v28  ;;  %v842_v28 = vld [vmem:[#allocation7 + $0x48] sm:$0xff] }
 0x4d3   :  { %1446 = vmatprep.subr.mxu0 %v1616_v1 }
 0x4d4   :  { %1447 = vmatpush3.msra.mxu0 %v1721_v30 }
 0x4d5   :  { %1448 = vmatprep.subr.mxu0 %v1616_v1 }
 0x4d6   :  { %1449 = vmatpush3.msra.mxu0 %v1725_v32 }
 0x4d7   :  { %1450 = vmatprep.subr.mxu0 %v1616_v1 }
 0x4d8   :  { %1451 = vmatpush3.msra.mxu0 %v1729_v34  ;;  %v840_v34 = vld [vmem:[#allocation7 + $0x38] sm:$0xff] }
 0x4d9   :  { %1452 = vmatprep.subr.mxu0 %v1616_v1 }
 0x4da   :  { %1453 = vmatpush3.msra.mxu0 %v1733_v36  ;;  %v838_v36 = vld [vmem:[#allocation7 + $0x28] sm:$0xff] }
 0x4db   :  { %1454 = vmatprep.subr.mxu0 %v1616_v1 }
 0x4dc   :  { %1455 = vmatpush3.msra.mxu0 %v1737_v38  ;;  %v836_v38 = vld [vmem:[#allocation7 + $0x18] sm:$0xff] }
 0x4dd   :  { %1456 = vmatprep.subr.mxu0 %v1616_v1 }
 0x4de   :  { %1457 = vmatpush3.msra.mxu0 %v1741_v40  ;;  %v834_v40 = vld [vmem:[#allocation7 + $0x8] sm:$0xff] }
 0x57f   :  { %v683_v7 = vpop.f32.mrf.mxu0 }
 0x580   :  { %v687_v9 = vadd.f32 %v1856_v61, %v683_v7 }
 0x581   :  { %v1390_v11 = vpop.f32.mrf.mxu0 }
 0x582   :  { %1518 = vtanh.f32 %v687_v9 }
 0x58f   :  { %v1519_v15 = vpop.eup %1518 }
 0x590   :  { %1424 = vmatmul.mubr.f32.vlgmr.msra.gmra.mxu1 %v1519_v15 }
 0x591   :  { %1493 = vmatprep.mubr.msk.f32.mxu1 %vm1617_vm0, %v1616_v1  ;;  %1462 = vmatpush3.msra.mxu1 %v848_v18 }
 0x592   :  { %1463 = vmatprep.subr.mxu1 %v1616_v1 }
 0x593   :  { %1464 = vmatpush3.msra.mxu1 %v847_v20 }
 0x594   :  { %1465 = vmatprep.subr.mxu1 %v1616_v1 }
 0x595   :  { %1466 = vmatpush3.msra.mxu1 %v846_v22 }
 0x596   :  { %1467 = vmatprep.subr.mxu1 %v1616_v1 }
 0x597   :  { %1468 = vmatpush3.msra.mxu1 %v845_v24 }
 0x598   :  { %1469 = vmatprep.subr.mxu1 %v1616_v1 }
 0x599   :  { %1470 = vmatpush3.msra.mxu1 %v844_v26 }
 0x59a   :  { %1471 = vmatprep.subr.mxu1 %v1616_v1 }
 0x59b   :  { %1472 = vmatpush3.msra.mxu1 %v843_v27 }
 0x59c   :  { %1473 = vmatprep.subr.mxu1 %v1616_v1 }
 0x59d   :  { %1474 = vmatpush3.msra.mxu1 %v842_v28 }
 0x59e   :  { %1475 = vmatprep.subr.mxu1 %v1616_v1 }
 0x59f   :  { %1476 = vmatpush3.msra.mxu1 %v841_v33 }
 0x5a0   :  { %1477 = vmatprep.subr.mxu1 %v1616_v1 }
 0x5a1   :  { %1478 = vmatpush3.msra.mxu1 %v840_v34 }
 0x5a2   :  { %1479 = vmatprep.subr.mxu1 %v1616_v1 }
 0x5a3   :  { %1480 = vmatpush3.msra.mxu1 %v839_v35 }
 0x5a4   :  { %1481 = vmatprep.subr.mxu1 %v1616_v1 }
 0x5a5   :  { %1482 = vmatpush3.msra.mxu1 %v838_v36 }
 0x5a6   :  { %1483 = vmatprep.subr.mxu1 %v1616_v1 }
 0x5a7   :  { %1484 = vmatpush3.msra.mxu1 %v837_v37 }
 0x5a8   :  { %1485 = vmatprep.subr.mxu1 %v1616_v1 }
 0x5a9   :  { %1486 = vmatpush3.msra.mxu1 %v836_v38 }
 0x5aa   :  { %1487 = vmatprep.subr.mxu1 %v1616_v1 }
 0x5ab   :  { %1488 = vmatpush3.msra.mxu1 %v835_v39 }
 0x5ac   :  { %1489 = vmatprep.subr.mxu1 %v1616_v1 }
 0x5ad   :  { %1490 = vmatpush3.msra.mxu1 %v834_v40 }
 0x5ae   :  { %1491 = vmatprep.subr.mxu1 %v1616_v1 }
 0x5af   :  { %1492 = vmatpush3.msra.mxu1 %v833_v41 }
 0x650   :  { %v755_v29 = vpop.f32.mrf.mxu1 }
 0x651   :  { %v759_v30 = vadd.f32 %v755_v29, %v1862_v0 }
 0x652   :  { %v1425_v31 = vpop.f32.mrf.mxu1 }
 0x653   :  { %1520 = vtanh.f32 %v759_v30 }
 0x660   :  { %v1521_v32 = vpop.eup %1520 }
 0x661   :  { %1459 = vmatmul.mubr.f32.vlgmr.msra.gmra.mxu0 %v1521_v32 }
 0x721   :  { %v827_v42 = vpop.f32.mrf.mxu0 }
 0x722   :  { %v831_v43 = vadd.f32 %v1860_v63, %v827_v42 }
 0x723   :  { %v1460_v44 = vpop.f32.mrf.mxu0 }
 0x724   :  { %1522 = vtanh.f32 %v831_v43 }
 0x731   :  { %v1523_v45 = vpop.eup %1522 }
 0x732   :  { %1494 = vmatmul.mubr.f32.vlgmr.msra.gmra.mxu1 %v1523_v45 }
 0x7f2   :  { %v922_v47 = vpop.f32.mrf.mxu1 }
 0x7f3   :  { %v923_v48 = vadd.f32 %v959_v46, %v922_v47 }
 0x7f4   :  { %v1495_v49 = vpop.f32.mrf.mxu1 }
 0x7f5   :  { %926 = vst [vmem:[#allocation8] sm:$0xff] %v923_v48 }
 0x7f6   :  { %1595 = shalt.err (!%p1592_p5)
}
 0x7f7   :  { %936 = dma.vmem_to_hbm [thread:$0]  %s934_s25, 128, %s2032_s5, [#allocation4]  }
 0x7f8   :  { %1608 = dma.done.wait [#allocation4], 128  }
 0x7f9   :  { %1609 = vsyncadd [#allocation4], 4294967168 }
 0x7fa   :  { %940 = vsyncpa [#allocation3], 1 }
 0x7fb   :  { %941 = vsyncpa [#allocation6], 1 }
 0x7fc   :  { %942 = vsyncpa [#allocation4], 1 }

</bundles_post_ra>
